<compile_context>
chip_gen: v6e
topology: v6e:2x2x1
jax: 0.10.0
libtpu: 0.0.40
codegen_flags: <defaults>
</compile_context>

<pallas_src>
import functools
import math

import jax
import jax.numpy as jnp
from jax.experimental import pallas as pl
from jax.experimental.pallas import tpu as pltpu


# ------------------------------ hardware queries ------------------------------

@functools.lru_cache(maxsize=None)
def _vmem_limit_bytes():
    """Scoped VMEM budget derived from the actual chip (v7x has half the VMEM
    of v5e/v6e); conservative 32 MiB fallback if the query is unavailable."""
    try:
        info = pltpu.get_tpu_info()
        cap = int(getattr(info, "vmem_capacity_bytes", 0))
        if cap > 0:
            return int(min(cap // 2, 64 * 1024 * 1024))
    except Exception:
        pass
    return 32 * 1024 * 1024


@functools.lru_cache(maxsize=None)
def _is_pre_v6():
    """True for v5-class and older TPUs (128-wide MXU, no bf16 EUP/VPU)."""
    try:
        kind = jax.devices()[0].device_kind.lower()
    except Exception:
        return False
    return any(tag in kind for tag in ("v2", "v3", "v4", "v5"))


# ------------------------------ tiling helpers ------------------------------

def _sublane_align(dtype):
    """Dtype-aware sublane alignment: 8 for 32-bit, 16 for 16-bit, 32 for 8-bit."""
    bits = jnp.dtype(dtype).itemsize * 8
    return {32: 8, 16: 16, 8: 32}.get(bits, 8)


def _pick_tile(dim, preferred, align):
    """Largest tile <= preferred that is a multiple of `align` and divides `dim`.
    Falls back to the full dimension (always legal for a BlockSpec)."""
    if dim <= preferred or dim % align != 0:
        return dim
    best = align
    t = align
    while t <= preferred:
        if dim % t == 0:
            best = t
        t += align
    return best


def _proj_tiles(m, n, k_dim, dtype, n_streams, n_outs, vmem_limit):
    """Tile picks for the projection matmuls, starting at 512-preferred and
    shrinking until the double-buffered footprint fits the VMEM budget."""
    sub = _sublane_align(dtype)
    ib = jnp.dtype(dtype).itemsize
    pm = pn = pk = 512
    while True:
        tm = _pick_tile(m, pm, sub)
        tn = _pick_tile(n, pn, 128)
        tk = _pick_tile(k_dim, pk, 128)
        foot = (2 * n_streams * tm * tk * ib      # activation tiles (double-buffered)
                + 2 * n_outs * tk * tn * ib       # weight tiles
                + 2 * n_outs * tn * ib            # bias tiles
                + 2 * n_outs * tm * tn * ib       # output tiles
                + n_outs * tm * tn * 4)           # f32 accumulators
        if foot <= int(0.6 * vmem_limit) or min(pm, pn, pk) <= 128:
            return tm, tn, tk
        if pn > 128:
            pn //= 2
        elif pm > 128:
            pm //= 2
        else:
            pk //= 2


# --------------------- fused Q/K/V projection (self-attention) ---------------------

def _qkv_self_kernel(x_ref, wq_ref, wk_ref, wv_ref, bq_ref, bk_ref, bv_ref,
                     oq_ref, ok_ref, ov_ref, accq, acck, accv):
    kstep = pl.program_id(2)

    @pl.when(kstep == 0)
    def _init():
        accq[...] = jnp.zeros(accq.shape, dtype=accq.dtype)
        acck[...] = jnp.zeros(acck.shape, dtype=acck.dtype)
        accv[...] = jnp.zeros(accv.shape, dtype=accv.dtype)

    # Single activation tile drives all three dots (x DMA'd once per grid step).
    x = x_ref[...]
    accq[...] += jnp.dot(x, wq_ref[...], preferred_element_type=jnp.float32)
    acck[...] += jnp.dot(x, wk_ref[...], preferred_element_type=jnp.float32)
    accv[...] += jnp.dot(x, wv_ref[...], preferred_element_type=jnp.float32)

    @pl.when(kstep == pl.num_programs(2) - 1)
    def _finalize():
        oq_ref[...] = (accq[...] + bq_ref[...]).astype(oq_ref.dtype)
        ok_ref[...] = (acck[...] + bk_ref[...]).astype(ok_ref.dtype)
        ov_ref[...] = (accv[...] + bv_ref[...]).astype(ov_ref.dtype)


def qkv_projection_self(x2d, wq_t, wk_t, wv_t, bq, bk, bv):
    """Q/K/V projections of the SAME activation: one x stream, three weight streams."""
    m, k_dim = x2d.shape
    n = wq_t.shape[1]
    vmem = _vmem_limit_bytes()
    tm, tn, tk = _proj_tiles(m, n, k_dim, x2d.dtype, n_streams=1, n_outs=3,
                             vmem_limit=vmem)
    grid = (m // tm, n // tn, k_dim // tk)

    x_spec = pl.BlockSpec((tm, tk), lambda i, j, kk: (i, kk))
    w_spec = pl.BlockSpec((tk, tn), lambda i, j, kk: (kk, j))
    b_spec = pl.BlockSpec((1, tn), lambda i, j, kk: (0, j))
    o_spec = pl.BlockSpec((tm, tn), lambda i, j, kk: (i, j))
    out_sds = jax.ShapeDtypeStruct((m, n), x2d.dtype)

    return pl.pallas_call(
        _qkv_self_kernel,
        out_shape=(out_sds, out_sds, out_sds),
        grid_spec=pltpu.PrefetchScalarGridSpec(
            num_scalar_prefetch=0,
            grid=grid,
            in_specs=[x_spec, w_spec, w_spec, w_spec, b_spec, b_spec, b_spec],
            out_specs=[o_spec, o_spec, o_spec],
            scratch_shapes=[pltpu.VMEM((tm, tn), jnp.float32)] * 3,
        ),
        compiler_params=pltpu.CompilerParams(
            dimension_semantics=("parallel", "parallel", "arbitrary"),
            vmem_limit_bytes=vmem),
    )(x2d, wq_t, wk_t, wv_t,
      bq.reshape(1, n), bk.reshape(1, n), bv.reshape(1, n))


# --------------------- fused Q/K/V projection (cross-attention) ---------------------

def _qkv_cross_kernel(xq_ref, xk_ref, xv_ref, wq_ref, wk_ref, wv_ref,
                      bq_ref, bk_ref, bv_ref,
                      oq_ref, ok_ref, ov_ref,
                      accq, acck, accv):
    kstep = pl.program_id(2)

    @pl.when(kstep == 0)
    def _init():
        accq[...] = jnp.zeros(accq.shape, dtype=accq.dtype)
        acck[...] = jnp.zeros(acck.shape, dtype=acck.dtype)
        accv[...] = jnp.zeros(accv.shape, dtype=accv.dtype)

    accq[...] += jnp.dot(xq_ref[...], wq_ref[...], preferred_element_type=jnp.float32)
    acck[...] += jnp.dot(xk_ref[...], wk_ref[...], preferred_element_type=jnp.float32)
    accv[...] += jnp.dot(xv_ref[...], wv_ref[...], preferred_element_type=jnp.float32)

    @pl.when(kstep == pl.num_programs(2) - 1)
    def _finalize():
        oq_ref[...] = (accq[...] + bq_ref[...]).astype(oq_ref.dtype)
        ok_ref[...] = (acck[...] + bk_ref[...]).astype(ok_ref.dtype)
        ov_ref[...] = (accv[...] + bv_ref[...]).astype(ov_ref.dtype)


def qkv_projection_cross(xq, xk, xv, wq_t, wk_t, wv_t, bq, bk, bv):
    """Three (M,K)x(K,N) projections of distinct activations, fused in one call."""
    m, k_dim = xq.shape
    n = wq_t.shape[1]
    vmem = _vmem_limit_bytes()
    tm, tn, tk = _proj_tiles(m, n, k_dim, xq.dtype, n_streams=3, n_outs=3,
                             vmem_limit=vmem)
    grid = (m // tm, n // tn, k_dim // tk)

    x_spec = pl.BlockSpec((tm, tk), lambda i, j, kk: (i, kk))
    w_spec = pl.BlockSpec((tk, tn), lambda i, j, kk: (kk, j))
    b_spec = pl.BlockSpec((1, tn), lambda i, j, kk: (0, j))
    o_spec = pl.BlockSpec((tm, tn), lambda i, j, kk: (i, j))
    out_sds = jax.ShapeDtypeStruct((m, n), xq.dtype)

    return pl.pallas_call(
        _qkv_cross_kernel,
        out_shape=(out_sds, out_sds, out_sds),
        grid_spec=pltpu.PrefetchScalarGridSpec(
            num_scalar_prefetch=0,
            grid=grid,
            in_specs=[x_spec, x_spec, x_spec,
                      w_spec, w_spec, w_spec,
                      b_spec, b_spec, b_spec],
            out_specs=[o_spec, o_spec, o_spec],
            scratch_shapes=[pltpu.VMEM((tm, tn), jnp.float32)] * 3,
        ),
        compiler_params=pltpu.CompilerParams(
            dimension_semantics=("parallel", "parallel", "arbitrary"),
            vmem_limit_bytes=vmem),
    )(xq, xk, xv, wq_t, wk_t, wv_t,
      bq.reshape(1, n), bk.reshape(1, n), bv.reshape(1, n))


# ------------------------------ standalone linear ------------------------------

def _linear_kernel(x_ref, w_ref, b_ref, o_ref, acc_ref):
    kstep = pl.program_id(2)

    @pl.when(kstep == 0)
    def _init():
        acc_ref[...] = jnp.zeros(acc_ref.shape, dtype=acc_ref.dtype)

    acc_ref[...] += jnp.dot(x_ref[...], w_ref[...], preferred_element_type=jnp.float32)

    @pl.when(kstep == pl.num_programs(2) - 1)
    def _finalize():
        o_ref[...] = (acc_ref[...] + b_ref[...]).astype(o_ref.dtype)


def linear(x2d, w_t, b):
    """y = x @ w_t + b with w_t pre-transposed to (in_dim, out_dim).
    Used only when the output projection cannot be fused into the attention kernel."""
    m, k_dim = x2d.shape
    n = w_t.shape[1]
    vmem = _vmem_limit_bytes()
    tm, tn, tk = _proj_tiles(m, n, k_dim, x2d.dtype, n_streams=1, n_outs=1,
                             vmem_limit=vmem)
    grid = (m // tm, n // tn, k_dim // tk)

    return pl.pallas_call(
        _linear_kernel,
        out_shape=jax.ShapeDtypeStruct((m, n), x2d.dtype),
        grid_spec=pltpu.PrefetchScalarGridSpec(
            num_scalar_prefetch=0,
            grid=grid,
            in_specs=[
                pl.BlockSpec((tm, tk), lambda i, j, kk: (i, kk)),
                pl.BlockSpec((tk, tn), lambda i, j, kk: (kk, j)),
                pl.BlockSpec((1, tn), lambda i, j, kk: (0, j)),
            ],
            out_specs=pl.BlockSpec((tm, tn), lambda i, j, kk: (i, j)),
            scratch_shapes=[pltpu.VMEM((tm, tn), jnp.float32)],
        ),
        compiler_params=pltpu.CompilerParams(
            dimension_semantics=("parallel", "parallel", "arbitrary"),
            vmem_limit_bytes=vmem),
    )(x2d, w_t, b.reshape(1, n))


# ------------------- attention (flash-style, fused output proj) -------------------

def _attn_kernel(q_ref, k_ref, v_ref, *rest,
                 num_heads, head_dim, fuse_out, exp_dtype):
    if fuse_out:
        wo_ref, bo_ref, o_ref, m_sc, l_sc, acc_sc = rest
    else:
        o_ref, m_sc, l_sc, acc_sc = rest

    kv = pl.program_id(2)

    @pl.when(kv == 0)
    def _init():
        m_sc[...] = jnp.full(m_sc.shape, -jnp.inf, dtype=m_sc.dtype)
        l_sc[...] = jnp.zeros(l_sc.shape, dtype=l_sc.dtype)
        acc_sc[...] = jnp.zeros(acc_sc.shape, dtype=acc_sc.dtype)

    # 1/sqrt(head_dim) is already folded into the Q projection weights/bias.
    q = q_ref[0]                      # (tq, H)
    k = k_ref[0]                      # (tkv, H)
    v = v_ref[0]                      # (tkv, H)

    # All heads of this (batch, q-tile) are handled in one grid step; the head
    # split is a static lane slice (no HBM-level head transposes anywhere).
    # TODO(synk): for head_dim < 128 the per-head lane slices underfill the MXU;
    # a head-batched dot_general is a possible follow-up if this loop turns out
    # to be MXU- rather than EUP-bound.
    for h in range(num_heads):
        sl = slice(h * head_dim, (h + 1) * head_dim)
        qh = q[:, sl]                 # (tq, hd)
        kh = k[:, sl]                 # (tkv, hd)
        vh = v[:, sl]                 # (tkv, hd)

        s = jax.lax.dot_general(      # (tq, tkv), f32 accumulation on the MXU
            qh, kh, (((1,), (1,)), ((), ())),
            preferred_element_type=jnp.float32)

        m_prev = m_sc[h]                                           # (tq, 1)
        m_new = jnp.maximum(m_prev, jnp.max(s, axis=-1, keepdims=True))
        alpha = jnp.exp(m_prev - m_new)                            # (tq, 1)
        # exp in bf16 on v6e/v7x when the inputs are bf16 (2x EUP throughput);
        # f32 on v5-class chips (no bf16 EUP) or f32 inputs.
        p = jnp.exp((s - m_new).astype(exp_dtype))                 # (tq, tkv)
        l_sc[h] = alpha * l_sc[h] + jnp.sum(p.astype(jnp.float32),
                                            axis=-1, keepdims=True)
        m_sc[h] = m_new
        pv = jnp.dot(p.astype(v.dtype), vh,
                     preferred_element_type=jnp.float32)           # (tq, hd)
        acc_sc[h] = alpha * acc_sc[h] + pv

    # TODO(synk): optional `mask` argument and train-mode attention dropout are
    # not implemented (this forward matches mask=None, eval mode).

    @pl.when(kv == pl.num_programs(2) - 1)
    def _finalize():
        outs = []
        for h in range(num_heads):
            # Exact reciprocal: runs once per q-tile on a (tq,1) vector, so the
            # cost is negligible and the output error of approx mode is gone.
            inv_l = pl.reciprocal(l_sc[h], approx=False)
            outs.append(acc_sc[h] * inv_l)                         # (tq, hd)
        ctx = jnp.concatenate(outs, axis=-1)                       # (tq, H), f32
        if fuse_out:
            # Output projection fused in: ctx never round-trips through HBM.
            y = jnp.dot(ctx.astype(wo_ref.dtype), wo_ref[...],
                        preferred_element_type=jnp.float32) + bo_ref[...]
            o_ref[0] = y.astype(o_ref.dtype)
        else:
            o_ref[0] = ctx.astype(o_ref.dtype)


def attention_core(Q, K, V, num_heads, wo_t=None, bo=None):
    """Q, K, V, output all in (B, S, H) layout; head split done in-kernel.
    If wo_t/bo are given, the output projection is fused into the finalize."""
    B, S, H = Q.shape
    head_dim = H // num_heads
    fuse_out = wo_t is not None
    is_v5 = _is_pre_v6()
    vmem = _vmem_limit_bytes()
    sub = _sublane_align(Q.dtype)

    # v5-class: 128-wide MXU, lowest HBM BW -> bigger tq (fewer K/V re-sweeps),
    # tkv=128. v6e/v7x: tkv=256 fills the 256-wide MXU contraction.
    tq = _pick_tile(S, 256 if is_v5 else 128, sub)
    tkv = _pick_tile(S, 128 if is_v5 else 256, sub)
    grid = (B, S // tq, S // tkv)

    exp_dtype = jnp.bfloat16 if (Q.dtype == jnp.bfloat16 and not is_v5) else jnp.float32

    q_spec = pl.BlockSpec((1, tq, H), lambda b, qi, ki: (b, qi, 0))
    kv_spec = pl.BlockSpec((1, tkv, H), lambda b, qi, ki: (b, ki, 0))
    in_specs = [q_spec, kv_spec, kv_spec]
    args = [Q, K, V]
    if fuse_out:
        # Constant block index -> wo/bo stay resident in VMEM across the grid.
        in_specs += [pl.BlockSpec((H, H), lambda b, qi, ki: (0, 0)),
                     pl.BlockSpec((1, H), lambda b, qi, ki: (0, 0))]
        args += [wo_t, bo.reshape(1, H)]

    kernel = functools.partial(
        _attn_kernel, num_heads=num_heads, head_dim=head_dim,
        fuse_out=fuse_out, exp_dtype=exp_dtype)

    return pl.pallas_call(
        kernel,
        out_shape=jax.ShapeDtypeStruct((B, S, H), Q.dtype),
        grid_spec=pltpu.PrefetchScalarGridSpec(
            num_scalar_prefetch=0,
            grid=grid,
            in_specs=in_specs,
            out_specs=pl.BlockSpec((1, tq, H), lambda b, qi, ki: (b, qi, 0)),
            scratch_shapes=[
                pltpu.VMEM((num_heads, tq, 1), jnp.float32),        # running max
                pltpu.VMEM((num_heads, tq, 1), jnp.float32),        # running sum
                pltpu.VMEM((num_heads, tq, head_dim), jnp.float32), # accumulator
            ],
        ),
        compiler_params=pltpu.CompilerParams(
            dimension_semantics=("parallel", "parallel", "arbitrary"),
            vmem_limit_bytes=vmem),
    )(*args)


# ----------------------------- module wrapper -----------------------------

def init_params(key, hidden_dim):
    """Deterministic init matching nn.Linear shapes (uniform +/- 1/sqrt(fan_in))."""
    bound = 1.0 / math.sqrt(hidden_dim)
    ks = jax.random.split(key, 8)

    def lin(kw, kb):
        w = jax.random.uniform(kw, (hidden_dim, hidden_dim), jnp.float32, -bound, bound)
        b = jax.random.uniform(kb, (hidden_dim,), jnp.float32, -bound, bound)
        return w, b

    wq, bq = lin(ks[0], ks[1])
    wk, bk = lin(ks[2], ks[3])
    wv, bv = lin(ks[4], ks[5])
    wo, bo = lin(ks[6], ks[7])
    return dict(wq=wq, bq=bq, wk=wk, bk=bk, wv=wv, bv=bv, wo=wo, bo=bo)


def prepare_params(params, num_heads):
    """One-time weight prep: transpose PyTorch (out,in) weights to (in,out) and
    fold the 1/sqrt(head_dim) attention scale into the Q projection."""
    hidden_dim = params["wq"].shape[0]
    head_dim = hidden_dim // num_heads
    inv_scale = 1.0 / math.sqrt(float(head_dim))
    return dict(
        wq_t=params["wq"].T * inv_scale, bq=params["bq"] * inv_scale,
        wk_t=params["wk"].T, bk=params["bk"],
        wv_t=params["wv"].T, bv=params["bv"],
        wo_t=params["wo"].T, bo=params["bo"])


def multi_head_attention(query, key, value, prepared, num_heads):
    """Forward pass equivalent to MultiHeadAttention.forward(query, key, value,
    mask=None) in eval mode. Inputs: (B, S, hidden_dim)."""
    B, S, H = query.shape

    if (query is key) and (key is value):
        # Self-attention: activation read once for all three projections.
        Q, K, V = qkv_projection_self(
            query.reshape(B * S, H),
            prepared["wq_t"], prepared["wk_t"], prepared["wv_t"],
            prepared["bq"], prepared["bk"], prepared["bv"])
    else:
        Q, K, V = qkv_projection_cross(
            query.reshape(B * S, H), key.reshape(B * S, H), value.reshape(B * S, H),
            prepared["wq_t"], prepared["wk_t"], prepared["wv_t"],
            prepared["bq"], prepared["bk"], prepared["bv"])

    Q3 = Q.reshape(B, S, H)
    K3 = K.reshape(B, S, H)
    V3 = V.reshape(B, S, H)

    wo_t = prepared["wo_t"]
    # Fuse the output projection only if wo_t comfortably fits resident in VMEM.
    fuse_out = int(wo_t.size) * jnp.dtype(wo_t.dtype).itemsize <= 4 * 1024 * 1024
    if fuse_out:
        out = attention_core(Q3, K3, V3, num_heads, wo_t=wo_t, bo=prepared["bo"])
    else:
        ctx = attention_core(Q3, K3, V3, num_heads)
        out = linear(ctx.reshape(B * S, H), wo_t, prepared["bo"]).reshape(B, S, H)
    return out


def _reference(query, key, value, params, num_heads):
    """Pure-JAX reference for correctness checking."""
    B, S, H = query.shape
    hd = H // num_heads
    Q = query @ params["wq"].T + params["bq"]
    K = key @ params["wk"].T + params["bk"]
    V = value @ params["wv"].T + params["bv"]
    Q = Q.reshape(B, S, num_heads, hd).transpose(0, 2, 1, 3)
    K = K.reshape(B, S, num_heads, hd).transpose(0, 2, 1, 3)
    V = V.reshape(B, S, num_heads, hd).transpose(0, 2, 1, 3)
    energy = jnp.einsum("bhqd,bhkd->bhqk", Q, K) / math.sqrt(hd)
    attn = jax.nn.softmax(energy, axis=-1)
    x = jnp.einsum("bhqk,bhkd->bhqd", attn, V)
    x = x.transpose(0, 2, 1, 3).reshape(B, S, H)
    return x @ params["wo"].T + params["bo"]


if __name__ == "__main__":
    B, S, H, NUM_HEADS = 2, 8, 32, 4

    root = jax.random.PRNGKey(0)
    k_param, k_q, k_k, k_v = jax.random.split(root, 4)

    params = init_params(k_param, H)
    prepared = prepare_params(params, NUM_HEADS)
    query = jax.random.normal(k_q, (B, S, H), jnp.float32)
    key = jax.random.normal(k_k, (B, S, H), jnp.float32)
    value = jax.random.normal(k_v, (B, S, H), jnp.float32)

    # Cross-attention path (distinct query / key / value activations).
    out = multi_head_attention(query, key, value, prepared, NUM_HEADS)
    out = jax.block_until_ready(out)
    ref = _reference(query, key, value, params, NUM_HEADS)
    assert out.shape == (B, S, H)
    assert jnp.allclose(out, ref, atol=1e-3, rtol=1e-3), "cross-attn mismatch vs reference"

    # Self-attention fast path (single activation stream in the QKV kernel).
    out_self = multi_head_attention(query, query, query, prepared, NUM_HEADS)
    out_self = jax.block_until_ready(out_self)
    ref_self = _reference(query, query, query, params, NUM_HEADS)
    assert jnp.allclose(out_self, ref_self, atol=1e-3, rtol=1e-3), "self-attn mismatch vs reference"

    print("KERNEL_OK")
</pallas_src>

<mosaic_0001>
module attributes {stable_mosaic.version = 11 : i64} {
  func.func @_qkv_cross_kernel(%arg0: i32, %arg1: i32, %arg2: i32, %arg3: memref<16x32xf32, #tpu.memory_space<vmem>>, %arg4: memref<16x32xf32, #tpu.memory_space<vmem>>, %arg5: memref<16x32xf32, #tpu.memory_space<vmem>>, %arg6: memref<32x32xf32, #tpu.memory_space<vmem>>, %arg7: memref<32x32xf32, #tpu.memory_space<vmem>>, %arg8: memref<32x32xf32, #tpu.memory_space<vmem>>, %arg9: memref<1x32xf32, #tpu.memory_space<vmem>>, %arg10: memref<1x32xf32, #tpu.memory_space<vmem>>, %arg11: memref<1x32xf32, #tpu.memory_space<vmem>>, %arg12: memref<16x32xf32, #tpu.memory_space<vmem>>, %arg13: memref<16x32xf32, #tpu.memory_space<vmem>>, %arg14: memref<16x32xf32, #tpu.memory_space<vmem>>, %arg15: memref<16x32xf32, #tpu.memory_space<vmem>>, %arg16: memref<16x32xf32, #tpu.memory_space<vmem>>, %arg17: memref<16x32xf32, #tpu.memory_space<vmem>>) attributes {dimension_semantics = [#tpu.dimension_semantics<parallel>, #tpu.dimension_semantics<parallel>, #tpu.dimension_semantics<arbitrary>], iteration_bounds = array<i64: 1, 1, 1>, scalar_prefetch = 0 : i64, scratch_operands = 3 : i64, tpu.core_type = #tpu.core_type<tc>, window_params = [{transform_indices = @transform_0, window_bounds = array<i64: 16, 32>}, {transform_indices = @transform_1, window_bounds = array<i64: 16, 32>}, {transform_indices = @transform_2, window_bounds = array<i64: 16, 32>}, {transform_indices = @transform_3, window_bounds = array<i64: 32, 32>}, {transform_indices = @transform_4, window_bounds = array<i64: 32, 32>}, {transform_indices = @transform_5, window_bounds = array<i64: 32, 32>}, {transform_indices = @transform_6, window_bounds = array<i64: 1, 32>}, {transform_indices = @transform_7, window_bounds = array<i64: 1, 32>}, {transform_indices = @transform_8, window_bounds = array<i64: 1, 32>}, {transform_indices = @transform_9, window_bounds = array<i64: 16, 32>}, {transform_indices = @transform_10, window_bounds = array<i64: 16, 32>}, {transform_indices = @transform_11, window_bounds = array<i64: 16, 32>}]} {
    %c0_i32 = arith.constant 0 : i32
    %0 = arith.cmpi eq, %arg2, %c0_i32 : i32
    %1 = arith.extui %0 : i1 to i32
    %c0_i32_0 = arith.constant 0 : i32
    %2 = arith.cmpi ne, %1, %c0_i32_0 : i32
    scf.if %2 {
      %cst_28 = arith.constant 0.000000e+00 : f32
      %24 = vector.broadcast %cst_28 : f32 to vector<16x32xf32>
      %c0_29 = arith.constant 0 : index
      %c0_30 = arith.constant 0 : index
      %25 = vector.load %arg15[%c0_29, %c0_30] : memref<16x32xf32, #tpu.memory_space<vmem>>, vector<16x32xf32>
      tpu.vector_store %arg15[%c0_29, %c0_30], %24 {strides = array<i32>} : memref<16x32xf32, #tpu.memory_space<vmem>>, vector<16x32xf32>,
      %cst_31 = arith.constant 0.000000e+00 : f32
      %26 = vector.broadcast %cst_31 : f32 to vector<16x32xf32>
      %c0_32 = arith.constant 0 : index
      %c0_33 = arith.constant 0 : index
      %27 = vector.load %arg16[%c0_32, %c0_33] : memref<16x32xf32, #tpu.memory_space<vmem>>, vector<16x32xf32>
      tpu.vector_store %arg16[%c0_32, %c0_33], %26 {strides = array<i32>} : memref<16x32xf32, #tpu.memory_space<vmem>>, vector<16x32xf32>,
      %cst_34 = arith.constant 0.000000e+00 : f32
      %28 = vector.broadcast %cst_34 : f32 to vector<16x32xf32>
      %c0_35 = arith.constant 0 : index
      %c0_36 = arith.constant 0 : index
      %29 = vector.load %arg17[%c0_35, %c0_36] : memref<16x32xf32, #tpu.memory_space<vmem>>, vector<16x32xf32>
      tpu.vector_store %arg17[%c0_35, %c0_36], %28 {strides = array<i32>} : memref<16x32xf32, #tpu.memory_space<vmem>>, vector<16x32xf32>,
    } else {
    }
    %c0 = arith.constant 0 : index
    %c0_1 = arith.constant 0 : index
    %3 = vector.load %arg15[%c0, %c0_1] : memref<16x32xf32, #tpu.memory_space<vmem>>, vector<16x32xf32>
    %c0_2 = arith.constant 0 : index
    %c0_3 = arith.constant 0 : index
    %4 = vector.load %arg3[%c0_2, %c0_3] : memref<16x32xf32, #tpu.memory_space<vmem>>, vector<16x32xf32>
    %c0_4 = arith.constant 0 : index
    %c0_5 = arith.constant 0 : index
    %5 = vector.load %arg6[%c0_4, %c0_5] : memref<32x32xf32, #tpu.memory_space<vmem>>, vector<32x32xf32>
    %cst = arith.constant dense<0.000000e+00> : vector<16x32xf32>
    %6 = tpu.matmul %4, %5, %cst {dimension_numbers = #tpu.dot_dimension_numbers<[1], [0], [0], [1], [0, 0, 1, 1], [], []>} : vector<16x32xf32>, vector<32x32xf32>, vector<16x32xf32> -> vector<16x32xf32>
    %7 = arith.addf %3, %6 : vector<16x32xf32>
    %c0_6 = arith.constant 0 : index
    %c0_7 = arith.constant 0 : index
    %8 = vector.load %arg15[%c0_6, %c0_7] : memref<16x32xf32, #tpu.memory_space<vmem>>, vector<16x32xf32>
    tpu.vector_store %arg15[%c0_6, %c0_7], %7 {strides = array<i32>} : memref<16x32xf32, #tpu.memory_space<vmem>>, vector<16x32xf32>,
    %c0_8 = arith.constant 0 : index
    %c0_9 = arith.constant 0 : index
    %9 = vector.load %arg16[%c0_8, %c0_9] : memref<16x32xf32, #tpu.memory_space<vmem>>, vector<16x32xf32>
    %c0_10 = arith.constant 0 : index
    %c0_11 = arith.constant 0 : index
    %10 = vector.load %arg4[%c0_10, %c0_11] : memref<16x32xf32, #tpu.memory_space<vmem>>, vector<16x32xf32>
    %c0_12 = arith.constant 0 : index
    %c0_13 = arith.constant 0 : index
    %11 = vector.load %arg7[%c0_12, %c0_13] : memref<32x32xf32, #tpu.memory_space<vmem>>, vector<32x32xf32>
    %cst_14 = arith.constant dense<0.000000e+00> : vector<16x32xf32>
    %12 = tpu.matmul %10, %11, %cst_14 {dimension_numbers = #tpu.dot_dimension_numbers<[1], [0], [0], [1], [0, 0, 1, 1], [], []>} : vector<16x32xf32>, vector<32x32xf32>, vector<16x32xf32> -> vector<16x32xf32>
    %13 = arith.addf %9, %12 : vector<16x32xf32>
    %c0_15 = arith.constant 0 : index
    %c0_16 = arith.constant 0 : index
    %14 = vector.load %arg16[%c0_15, %c0_16] : memref<16x32xf32, #tpu.memory_space<vmem>>, vector<16x32xf32>
    tpu.vector_store %arg16[%c0_15, %c0_16], %13 {strides = array<i32>} : memref<16x32xf32, #tpu.memory_space<vmem>>, vector<16x32xf32>,
    %c0_17 = arith.constant 0 : index
    %c0_18 = arith.constant 0 : index
    %15 = vector.load %arg17[%c0_17, %c0_18] : memref<16x32xf32, #tpu.memory_space<vmem>>, vector<16x32xf32>
    %c0_19 = arith.constant 0 : index
    %c0_20 = arith.constant 0 : index
    %16 = vector.load %arg5[%c0_19, %c0_20] : memref<16x32xf32, #tpu.memory_space<vmem>>, vector<16x32xf32>
    %c0_21 = arith.constant 0 : index
    %c0_22 = arith.constant 0 : index
    %17 = vector.load %arg8[%c0_21, %c0_22] : memref<32x32xf32, #tpu.memory_space<vmem>>, vector<32x32xf32>
    %cst_23 = arith.constant dense<0.000000e+00> : vector<16x32xf32>
    %18 = tpu.matmul %16, %17, %cst_23 {dimension_numbers = #tpu.dot_dimension_numbers<[1], [0], [0], [1], [0, 0, 1, 1], [], []>} : vector<16x32xf32>, vector<32x32xf32>, vector<16x32xf32> -> vector<16x32xf32>
    %19 = arith.addf %15, %18 : vector<16x32xf32>
    %c0_24 = arith.constant 0 : index
    %c0_25 = arith.constant 0 : index
    %20 = vector.load %arg17[%c0_24, %c0_25] : memref<16x32xf32, #tpu.memory_space<vmem>>, vector<16x32xf32>
    tpu.vector_store %arg17[%c0_24, %c0_25], %19 {strides = array<i32>} : memref<16x32xf32, #tpu.memory_space<vmem>>, vector<16x32xf32>,
    %c0_i32_26 = arith.constant 0 : i32
    %21 = arith.cmpi eq, %arg2, %c0_i32_26 : i32
    %22 = arith.extui %21 : i1 to i32
    %c0_i32_27 = arith.constant 0 : i32
    %23 = arith.cmpi ne, %22, %c0_i32_27 : i32
    scf.if %23 {
      %c0_28 = arith.constant 0 : index
      %c0_29 = arith.constant 0 : index
      %24 = vector.load %arg15[%c0_28, %c0_29] : memref<16x32xf32, #tpu.memory_space<vmem>>, vector<16x32xf32>
      %c0_30 = arith.constant 0 : index
      %c0_31 = arith.constant 0 : index
      %25 = vector.load %arg9[%c0_30, %c0_31] : memref<1x32xf32, #tpu.memory_space<vmem>>, vector<1x32xf32>
      %26 = vector.broadcast %25 : vector<1x32xf32> to vector<16x32xf32>
      %27 = arith.addf %24, %26 : vector<16x32xf32>
      %c0_32 = arith.constant 0 : index
      %c0_33 = arith.constant 0 : index
      %28 = vector.load %arg12[%c0_32, %c0_33] : memref<16x32xf32, #tpu.memory_space<vmem>>, vector<16x32xf32>
      tpu.vector_store %arg12[%c0_32, %c0_33], %27 {strides = array<i32>} : memref<16x32xf32, #tpu.memory_space<vmem>>, vector<16x32xf32>,
      %c0_34 = arith.constant 0 : index
      %c0_35 = arith.constant 0 : index
      %29 = vector.load %arg16[%c0_34, %c0_35] : memref<16x32xf32, #tpu.memory_space<vmem>>, vector<16x32xf32>
      %c0_36 = arith.constant 0 : index
      %c0_37 = arith.constant 0 : index
      %30 = vector.load %arg10[%c0_36, %c0_37] : memref<1x32xf32, #tpu.memory_space<vmem>>, vector<1x32xf32>
      %31 = vector.broadcast %30 : vector<1x32xf32> to vector<16x32xf32>
      %32 = arith.addf %29, %31 : vector<16x32xf32>
      %c0_38 = arith.constant 0 : index
      %c0_39 = arith.constant 0 : index
      %33 = vector.load %arg13[%c0_38, %c0_39] : memref<16x32xf32, #tpu.memory_space<vmem>>, vector<16x32xf32>
      tpu.vector_store %arg13[%c0_38, %c0_39], %32 {strides = array<i32>} : memref<16x32xf32, #tpu.memory_space<vmem>>, vector<16x32xf32>,
      %c0_40 = arith.constant 0 : index
      %c0_41 = arith.constant 0 : index
      %34 = vector.load %arg17[%c0_40, %c0_41] : memref<16x32xf32, #tpu.memory_space<vmem>>, vector<16x32xf32>
      %c0_42 = arith.constant 0 : index
      %c0_43 = arith.constant 0 : index
      %35 = vector.load %arg11[%c0_42, %c0_43] : memref<1x32xf32, #tpu.memory_space<vmem>>, vector<1x32xf32>
      %36 = vector.broadcast %35 : vector<1x32xf32> to vector<16x32xf32>
      %37 = arith.addf %34, %36 : vector<16x32xf32>
      %c0_44 = arith.constant 0 : index
      %c0_45 = arith.constant 0 : index
      %38 = vector.load %arg14[%c0_44, %c0_45] : memref<16x32xf32, #tpu.memory_space<vmem>>, vector<16x32xf32>
      tpu.vector_store %arg14[%c0_44, %c0_45], %37 {strides = array<i32>} : memref<16x32xf32, #tpu.memory_space<vmem>>, vector<16x32xf32>,
    } else {
    }
    return
  }
  func.func @transform_0(%arg0: i32, %arg1: i32, %arg2: i32) -> (i32, i32) {
    %c0_i32 = arith.constant 0 : i32
    return %arg0, %arg2 : i32, i32
  }
  func.func @transform_1(%arg0: i32, %arg1: i32, %arg2: i32) -> (i32, i32) {
    %c0_i32 = arith.constant 0 : i32
    return %arg0, %arg2 : i32, i32
  }
  func.func @transform_2(%arg0: i32, %arg1: i32, %arg2: i32) -> (i32, i32) {
    %c0_i32 = arith.constant 0 : i32
    return %arg0, %arg2 : i32, i32
  }
  func.func @transform_3(%arg0: i32, %arg1: i32, %arg2: i32) -> (i32, i32) {
    %c0_i32 = arith.constant 0 : i32
    return %arg2, %arg1 : i32, i32
  }
  func.func @transform_4(%arg0: i32, %arg1: i32, %arg2: i32) -> (i32, i32) {
    %c0_i32 = arith.constant 0 : i32
    return %arg2, %arg1 : i32, i32
  }
  func.func @transform_5(%arg0: i32, %arg1: i32, %arg2: i32) -> (i32, i32) {
    %c0_i32 = arith.constant 0 : i32
    return %arg2, %arg1 : i32, i32
  }
  func.func @transform_6(%arg0: i32, %arg1: i32, %arg2: i32) -> (i32, i32) {
    %c0_i32 = arith.constant 0 : i32
    %c0_i32_0 = arith.constant 0 : i32
    return %c0_i32, %arg1 : i32, i32
  }
  func.func @transform_7(%arg0: i32, %arg1: i32, %arg2: i32) -> (i32, i32) {
    %c0_i32 = arith.constant 0 : i32
    %c0_i32_0 = arith.constant 0 : i32
    return %c0_i32, %arg1 : i32, i32
  }
  func.func @transform_8(%arg0: i32, %arg1: i32, %arg2: i32) -> (i32, i32) {
    %c0_i32 = arith.constant 0 : i32
    %c0_i32_0 = arith.constant 0 : i32
    return %c0_i32, %arg1 : i32, i32
  }
  func.func @transform_9(%arg0: i32, %arg1: i32, %arg2: i32) -> (i32, i32) {
    %c0_i32 = arith.constant 0 : i32
    return %arg0, %arg1 : i32, i32
  }
  func.func @transform_10(%arg0: i32, %arg1: i32, %arg2: i32) -> (i32, i32) {
    %c0_i32 = arith.constant 0 : i32
    return %arg0, %arg1 : i32, i32
  }
  func.func @transform_11(%arg0: i32, %arg1: i32, %arg2: i32) -> (i32, i32) {
    %c0_i32 = arith.constant 0 : i32
    return %arg0, %arg1 : i32, i32
  }
}

</mosaic_0001>

<bundles_post_ra>
// kernel: tpu_custom_call.1
= control target key start
LH: loop header
LB: loop body
LE: loop exit
PB: predicated region body
PF: predicated region fallthrough
CT: control target
= control target key end

     0   :  { %17 = vsyncpa [#allocation6], 0  ;;  %s926_s0 = inlined_call_operand.hbm [shape: f32[16,32], index: 0, kind: input, shape index: {}]   ;;  %s927_s1 = inlined_call_operand.hbm [shape: f32[16,32], index: 1, kind: input, shape index: {}]   ;;  %s928_s2 = inlined_call_operand.hbm [shape: f32[16,32], index: 2, kind: input, shape index: {}]   ;;  %s929_s3 = inlined_call_operand.hbm [shape: f32[32,32], index: 3, kind: input, shape index: {}]   ;;  %s930_s4 = inlined_call_operand.hbm [shape: f32[32,32], index: 4, kind: input, shape index: {}]   ;;  %s931_s5 = inlined_call_operand.hbm [shape: f32[32,32], index: 5, kind: input, shape index: {}]   ;;  %s932_s6 = inlined_call_operand.vmem [shape: f32[1,32], index: 6, kind: input, shape index: {}]   ;;  %s933_s7 = inlined_call_operand.vmem [shape: f32[1,32], index: 7, kind: input, shape index: {}]   ;;  %s934_s8 = inlined_call_operand.vmem [shape: f32[1,32], index: 8, kind: input, shape index: {}]   ;;  %s935_s9 = inlined_call_operand.hbm [shape: f32[16,32], index: 9, kind: output, shape index: {0}]   ;;  %s936_s10 = inlined_call_operand.hbm [shape: f32[16,32], index: 10, kind: output, shape index: {1}]   ;;  %s937_s11 = inlined_call_operand.hbm [shape: f32[16,32], index: 11, kind: output, shape index: {2}]  }
   0x1   :  { %18 = vsyncpa [#allocation9], 0 }
   0x2   :  { %19 = vsyncpa [#allocation12], 0 }
   0x3   :  { %20 = vsyncpa [#allocation15], 0 }
   0x4   :  { %21 = vsyncpa [#allocation7], 0 }
   0x5   :  { %22 = vsyncpa [#allocation18], 0  ;;  %s767_s17 = smov [#allocation8]   ;;  %s768_s19 = smov [#allocation11]  }
   0x6   :  { %s40_s18 = sshll.u32 %s767_s17, 4  ;;  %s64_s20 = sshll.u32 %s768_s19, 4  ;;  %s41_s18 = int_to_ptr.vmem [resolvable:$true] %s40_s18  ;;  %s65_s20 = int_to_ptr.vmem [resolvable:$true] %s64_s20 }
   0x7   :  { %s583_s21 = scalar_lea.vmem %s41_s18, 256  ;;  %p588_p1 = scmp.lt.s32.totalorder %s41_s18, %s41_s18 }
   0x8   :  { %p584_p0 = scmp.ne.s32.totalorder %s41_s18, %s583_s21  ;;  %p589_p2 = scmp.lt.s32.totalorder %s583_s21, %s583_s21 }
   0xa   :  { %p590_p3 = por %p589_p2, %p588_p1 }
   0xc   :  { %p591_p4 = pnand %p590_p3, %p584_p0 }
   0xe   :  { %594 = shalt.err (!%p591_p4)
}
   0xf   :  { %s769_s22 = smov 128   ;;  %s770_s23 = smov 8  }
  0x10   :  { %46 = dma.hbm_to_vmem [thread:$0]  %s927_s1, 256, %s41_s18, [#allocation9], %s769_s22, %s769_s22, %s770_s23  }
  0x11   :  { %s603_s26 = scalar_lea.vmem %s65_s20, 512  ;;  %p608_p6 = scmp.lt.s32.totalorder %s65_s20, %s65_s20 }
  0x12   :  { %p604_p5 = scmp.ne.s32.totalorder %s65_s20, %s603_s26  ;;  %p609_p7 = scmp.lt.s32.totalorder %s603_s26, %s603_s26 }
  0x14   :  { %p610_p8 = por %p609_p7, %p608_p6 }
  0x16   :  { %p611_p9 = pnand %p610_p8, %p604_p5 }
  0x18   :  { %614 = shalt.err (!%p611_p9)
}
  0x19   :  { %70 = dma.hbm_to_vmem [thread:$0]  %s929_s3, 512, %s65_s20, [#allocation12], %s769_s22, %s769_s22, %s770_s23  }
  0x1a   :  { %s771_s29 = smov [#allocation5]   ;;  %s772_s12 = smov [#allocation10]  }
  0x1b   :  { %s28_s30 = sshll.u32 %s771_s29, 4  ;;  %s52_s13 = sshll.u32 %s772_s12, 4  ;;  %s29_s30 = int_to_ptr.vmem [resolvable:$true] %s28_s30  ;;  %s53_s13 = int_to_ptr.vmem [resolvable:$true] %s52_s13 }
  0x1c   :  { %s623_s1 = scalar_lea.vmem %s29_s30, 256  ;;  %p628_p11 = scmp.lt.s32.totalorder %s29_s30, %s29_s30 }
  0x1d   :  { %p624_p10 = scmp.ne.s32.totalorder %s29_s30, %s623_s1  ;;  %p629_p12 = scmp.lt.s32.totalorder %s623_s1, %s623_s1 }
  0x1f   :  { %p630_p13 = por %p629_p12, %p628_p11 }
  0x21   :  { %p631_p0 = pnand %p630_p13, %p624_p10 }
  0x23   :  { %634 = shalt.err (!%p631_p0)
}
  0x24   :  { %34 = dma.hbm_to_vmem [thread:$0]  %s926_s0, 256, %s29_s30, [#allocation6], %s769_s22, %s769_s22, %s770_s23  }
  0x25   :  { %s643_s3 = scalar_lea.vmem %s53_s13, 256  ;;  %p648_p2 = scmp.lt.s32.totalorder %s53_s13, %s53_s13 }
  0x26   :  { %p644_p1 = scmp.ne.s32.totalorder %s53_s13, %s643_s3  ;;  %p649_p3 = scmp.lt.s32.totalorder %s643_s3, %s643_s3 }
  0x28   :  { %p650_p4 = por %p649_p3, %p648_p2 }
  0x2a   :  { %p651_p5 = pnand %p650_p4, %p644_p1 }
  0x2c   :  { %654 = shalt.err (!%p651_p5)
}
  0x2d   :  { %58 = dma.hbm_to_vmem [thread:$0]  %s928_s2, 256, %s53_s13, [#allocation9], %s769_s22, %s769_s22, %s770_s23  }
  0x2e   :  { %s773_s18 = smov [#allocation13]   ;;  %s774_s20 = smov [#allocation14]  }
  0x2f   :  { %s76_s19 = sshll.u32 %s773_s18, 4  ;;  %s88_s21 = sshll.u32 %s774_s20, 4  ;;  %s77_s19 = int_to_ptr.vmem [resolvable:$true] %s76_s19  ;;  %s89_s21 = int_to_ptr.vmem [resolvable:$true] %s88_s21 }
  0x30   :  { %s663_s0 = scalar_lea.vmem %s77_s19, 512  ;;  %p668_p7 = scmp.lt.s32.totalorder %s77_s19, %s77_s19 }
  0x31   :  { %p664_p6 = scmp.ne.s32.totalorder %s77_s19, %s663_s0  ;;  %p669_p8 = scmp.lt.s32.totalorder %s663_s0, %s663_s0 }
  0x33   :  { %p670_p9 = por %p669_p8, %p668_p7 }
  0x35   :  { %p671_p10 = pnand %p670_p9, %p664_p6 }
  0x37   :  { %674 = shalt.err (!%p671_p10)
}
  0x38   :  { %82 = dma.hbm_to_vmem [thread:$0]  %s930_s4, 512, %s77_s19, [#allocation12], %s769_s22, %s769_s22, %s770_s23  }
  0x39   :  { %s683_s2 = scalar_lea.vmem %s89_s21, 512  ;;  %p688_p12 = scmp.lt.s32.totalorder %s89_s21, %s89_s21 }
  0x3a   :  { %p684_p11 = scmp.ne.s32.totalorder %s89_s21, %s683_s2  ;;  %p689_p13 = scmp.lt.s32.totalorder %s683_s2, %s683_s2 }
  0x3c   :  { %p690_p0 = por %p689_p13, %p688_p12 }
  0x3e   :  { %p691_p1 = pnand %p690_p0, %p684_p11 }
  0x40   :  { %694 = shalt.err (!%p691_p1)
}
  0x41   :  { %94 = dma.hbm_to_vmem [thread:$0]  %s931_s5, 512, %s89_s21, [#allocation15], %s769_s22, %s769_s22, %s770_s23  }
  0x42   :  { %755 = dma.done.wait [#allocation6], 256  }
  0x43   :  { %756 = vsyncadd [#allocation6], 4294967040 }
  0x44   :  { %757 = dma.done.wait [#allocation9], 512  }
  0x45   :  { %758 = vsyncadd [#allocation9], 4294966784 }
  0x46   :  { %759 = dma.done.wait [#allocation12], 1024  }
  0x47   :  { %760 = vsyncadd [#allocation12], 4294966272 }
  0x48   :  { %761 = dma.done.wait [#allocation15], 512  }
  0x49   :  { %762 = vsyncadd [#allocation15], 4294966784  ;;  %vm123_vm0 = vcmask 261120   ;;  %v775_v0 = vmov 0.0   ;;  %v137_v1 = vld [vmem:[#allocation11 + $0x18] sm:$0xff]  ;;  %v136_v2 = vld [vmem:[#allocation11 + $0x10] sm:$0xff] }
  0x4a   :  { %125 = vst.msk [vmem:[#allocation2 + $0x8] sm:$0xff] %vm123_vm0, %v775_v0  ;;  %124 = vst.msk [vmem:[#allocation2] sm:$0xff] %vm123_vm0, %v775_v0  ;;  %530 = vmatprep.subr.mxu0 %v137_v1  ;;  %v231_v3 = vld [vmem:[#allocation13 + $0x18] sm:$0xff]  ;;  %v132_v4 = vld [vmem:[#allocation5] sm:$0xff]  ;;  %s776_s28 = smov [#allocation16]  }
  0x4b   :  { %126 = vst.msk [vmem:[#allocation3] sm:$0xff] %vm123_vm0, %v775_v0  ;;  %127 = vst.msk [vmem:[#allocation3 + $0x8] sm:$0xff] %vm123_vm0, %v775_v0  ;;  %531 = vmatpush3.msra.mxu0 %v137_v1  ;;  %v135_v5 = vld [vmem:[#allocation11 + $0x8] sm:$0xff]  ;;  %541 = vmatprep.subr.mxu1 %v231_v3  ;;  %v230_v6 = vld [vmem:[#allocation13 + $0x10] sm:$0xff]  ;;  %s457_s29 = sshll.u32 %s776_s28, 4  ;;  %s458_s29 = int_to_ptr.vmem [resolvable:$true] %s457_s29 }
  0x4c   :  { %128 = vst.msk [vmem:[#allocation4] sm:$0xff] %vm123_vm0, %v775_v0  ;;  %129 = vst.msk [vmem:[#allocation4 + $0x8] sm:$0xff] %vm123_vm0, %v775_v0  ;;  %532 = vmatprep.subr.mxu0 %v136_v2  ;;  %542 = vmatpush3.msra.mxu1 %v231_v3  ;;  %v134_v7 = vld [vmem:[#allocation11] sm:$0xff]  ;;  %v229_v8 = vld [vmem:[#allocation13 + $0x8] sm:$0xff]  ;;  %s695_s15 = scalar_lea.vmem %s458_s29, 256  ;;  %p700_p3 = scmp.lt.s32.totalorder %s458_s29, %s458_s29 }
  0x4d   :  { %533 = vmatpush3.msra.mxu0 %v136_v2  ;;  %538 = vmatprep.mubr.msk.f32.mxu0 %vm123_vm0, %v132_v4  ;;  %v133_v9 = vld [vmem:[#allocation5 + $0x8] sm:$0xff]  ;;  %v228_v11 = vld [vmem:[#allocation13] sm:$0xff]  ;;  %v323_v12 = vld [vmem:[#allocation14 + $0x10] sm:$0xff]  ;;  %p696_p2 = scmp.ne.s32.totalorder %s458_s29, %s695_s15  ;;  %p701_p4 = scmp.lt.s32.totalorder %s695_s15, %s695_s15 }
  0x4e   :  { %534 = vmatprep.subr.mxu0 %v135_v5  ;;  %543 = vmatprep.subr.mxu1 %v230_v6  ;;  %v324_v10 = vld [vmem:[#allocation14 + $0x18] sm:$0xff]  ;;  %v226_v13 = vld [vmem:[#allocation8] sm:$0xff]  ;;  %v322_v14 = vld [vmem:[#allocation14 + $0x8] sm:$0xff] }
  0x4f   :  { %535 = vmatpush3.msra.mxu0 %v135_v5  ;;  %544 = vmatpush3.msra.mxu1 %v230_v6  ;;  %v227_v15 = vld [vmem:[#allocation8 + $0x8] sm:$0xff]  ;;  %v319_v16 = vld [vmem:[#allocation10] sm:$0xff]  ;;  %v321_v17 = vld [vmem:[#allocation14] sm:$0xff]  ;;  %p702_p5 = por %p701_p4, %p700_p3 }
  0x50   :  { %536 = vmatprep.subr.mxu0 %v134_v7  ;;  %545 = vmatprep.subr.mxu1 %v229_v8  ;;  %v320_v18 = vld [vmem:[#allocation10 + $0x8] sm:$0xff]  ;;  %v509_v34 = vld [vmem:[%s932_s6] ss:$0 sm:$0xff]  ;;  %s777_s6 = smov [#allocation17]  }
  0x51   :  { %537 = vmatpush3.msra.mxu0 %v134_v7  ;;  %546 = vmatpush3.msra.mxu1 %v229_v8  ;;  %v131_v19 = vld [vmem:[#allocation2 + $0x8] sm:$0xff]  ;;  %v130_v21 = vld [vmem:[#allocation2] sm:$0xff]  ;;  %s469_s13 = sshll.u32 %s777_s6, 4  ;;  %p703_p6 = pnand %p702_p5, %p696_p2  ;;  %s470_s13 = int_to_ptr.vmem [resolvable:$true] %s469_s13 }
  0x52   :  { %539 = vmatmul.mubr.msk.f32.vlgmr.msra.gmra.mxu0 %vm123_vm0, %v133_v9  ;;  %552 = vmatprep.subr.mxu0 %v324_v10  ;;  %v225_v24 = vld [vmem:[#allocation3 + $0x8] sm:$0xff]  ;;  %v224_v27 = vld [vmem:[#allocation3] sm:$0xff]  ;;  %v510_v40 = vld [vmem:[%s933_s7] ss:$0 sm:$0xff] }
  0x53   :  { %553 = vmatpush3.msra.mxu0 %v324_v10  ;;  %547 = vmatprep.subr.mxu1 %v228_v11  ;;  %v318_v30 = vld [vmem:[#allocation4 + $0x8] sm:$0xff]  ;;  %v317_v33 = vld [vmem:[#allocation4] sm:$0xff] }
  0x54   :  { %554 = vmatprep.subr.mxu0 %v323_v12  ;;  %548 = vmatpush3.msra.mxu1 %v228_v11  ;;  %v511_v45 = vld [vmem:[%s934_s8] ss:$0 sm:$0xff] }
  0x55   :  { %555 = vmatpush3.msra.mxu0 %v323_v12  ;;  %549 = vmatprep.mubr.msk.f32.mxu1 %vm123_vm0, %v226_v13 }
  0x56   :  { %556 = vmatprep.subr.mxu0 %v322_v14  ;;  %550 = vmatmul.mubr.msk.f32.vlgmr.msra.gmra.mxu1 %vm123_vm0, %v227_v15 }
  0x57   :  { %557 = vmatpush3.msra.mxu0 %v322_v14  ;;  %560 = vmatprep.mubr.msk.f32.mxu0 %vm123_vm0, %v319_v16 }
  0x58   :  { %558 = vmatprep.subr.mxu0 %v321_v17 }
  0x59   :  { %559 = vmatpush3.msra.mxu0 %v321_v17 }
  0x5a   :  { %561 = vmatmul.mubr.msk.f32.vlgmr.msra.gmra.mxu0 %vm123_vm0, %v320_v18 }
 0x112   :  { %v540_v20 = vpop.f32.mrf.mxu0 }
 0x113   :  { %v221_v22 = vadd.f32 %v540_v20, %v131_v19 }
 0x114   :  { %v211_v23 = vpop.f32.mrf.mxu0 }
 0x115   :  { %223 = vst.msk [vmem:[#allocation2 + $0x8] sm:$0xff] %vm123_vm0, %v221_v22  ;;  %v220_v25 = vadd.f32 %v211_v23, %v130_v21 }
 0x116   :  { %v551_v26 = vpop.f32.mrf.mxu1 }
 0x117   :  { %222 = vst.msk [vmem:[#allocation2] sm:$0xff] %vm123_vm0, %v220_v25  ;;  %v314_v28 = vadd.f32 %v551_v26, %v225_v24 }
 0x118   :  { %v304_v29 = vpop.f32.mrf.mxu1 }
 0x119   :  { %316 = vst.msk [vmem:[#allocation3 + $0x8] sm:$0xff] %vm123_vm0, %v314_v28  ;;  %v313_v31 = vadd.f32 %v304_v29, %v224_v27 }
 0x11a   :  { %v562_v32 = vpop.f32.mrf.mxu0 }
 0x11b   :  { %315 = vst.msk [vmem:[#allocation3] sm:$0xff] %vm123_vm0, %v313_v31  ;;  %v407_v35 = vadd.f32 %v562_v32, %v318_v30 }
 0x11c   :  { %v397_v36 = vpop.f32.mrf.mxu0  ;;  %v414_v37 = vld [vmem:[#allocation2 + $0x8] sm:$0xff] }
 0x11d   :  { %409 = vst.msk [vmem:[#allocation4 + $0x8] sm:$0xff] %vm123_vm0, %v407_v35  ;;  %v406_v38 = vadd.f32 %v397_v36, %v317_v33  ;;  %v423_v39 = vadd.f32 %v509_v34, %v414_v37 }
 0x11e   :  { %v413_v41 = vld [vmem:[#allocation2] sm:$0xff] }
 0x11f   :  { %408 = vst.msk [vmem:[#allocation4] sm:$0xff] %vm123_vm0, %v406_v38  ;;  %v422_v42 = vadd.f32 %v509_v34, %v413_v41  ;;  %425 = vst.msk [vmem:[#allocation16 + $0x8] sm:$0xff] %vm123_vm0, %v423_v39 }
 0x120   :  { %v427_v43 = vld [vmem:[#allocation3 + $0x8] sm:$0xff] }
 0x121   :  { %v436_v44 = vadd.f32 %v510_v40, %v427_v43  ;;  %424 = vst.msk [vmem:[#allocation16] sm:$0xff] %vm123_vm0, %v422_v42 }
 0x122   :  { %v426_v46 = vld [vmem:[#allocation3] sm:$0xff] }
 0x123   :  { %706 = shalt.err (!%p703_p6)
}
 0x124   :  { %463 = dma.vmem_to_hbm [thread:$0]  %s458_s29, 256, %s935_s9, [#allocation7], %s769_s22, %s769_s22, %s770_s23   ;;  %v435_v47 = vadd.f32 %v510_v40, %v426_v46  ;;  %438 = vst.msk [vmem:[#allocation17 + $0x8] sm:$0xff] %vm123_vm0, %v436_v44  ;;  %v440_v48 = vld [vmem:[#allocation4 + $0x8] sm:$0xff] }
 0x125   :  { %s778_s8 = smov [#allocation19]   ;;  %v449_v49 = vadd.f32 %v511_v45, %v440_v48  ;;  %s715_s17 = scalar_lea.vmem %s470_s13, 256 }
 0x126   :  { %s481_s16 = sshll.u32 %s778_s8, 4  ;;  %437 = vst.msk [vmem:[#allocation17] sm:$0xff] %vm123_vm0, %v435_v47  ;;  %p716_p7 = scmp.ne.s32.totalorder %s470_s13, %s715_s17  ;;  %s482_s16 = int_to_ptr.vmem [resolvable:$true] %s481_s16 }
 0x127   :  { %p720_p8 = scmp.lt.s32.totalorder %s470_s13, %s470_s13  ;;  %p721_p9 = scmp.lt.s32.totalorder %s715_s17, %s715_s17 }
 0x129   :  { %p722_p10 = por %p721_p9, %p720_p8 }
 0x12b   :  { %p723_p11 = pnand %p722_p10, %p716_p7 }
 0x12d   :  { %726 = shalt.err (!%p723_p11)
}
 0x12e   :  { %475 = dma.vmem_to_hbm [thread:$0]  %s470_s13, 256, %s936_s10, [#allocation18], %s769_s22, %s769_s22, %s770_s23   ;;  %v439_v50 = vld [vmem:[#allocation4] sm:$0xff]  ;;  %451 = vst.msk [vmem:[#allocation19 + $0x8] sm:$0xff] %vm123_vm0, %v449_v49 }
 0x12f   :  { %v448_v51 = vadd.f32 %v511_v45, %v439_v50  ;;  %s735_s19 = scalar_lea.vmem %s482_s16, 256  ;;  %p740_p13 = scmp.lt.s32.totalorder %s482_s16, %s482_s16 }
 0x130   :  { %p736_p12 = scmp.ne.s32.totalorder %s482_s16, %s735_s19  ;;  %p741_p0 = scmp.lt.s32.totalorder %s735_s19, %s735_s19 }
 0x131   :  { %450 = vst.msk [vmem:[#allocation19] sm:$0xff] %vm123_vm0, %v448_v51 }
 0x132   :  { %p742_p1 = por %p741_p0, %p740_p13 }
 0x134   :  { %p743_p2 = pnand %p742_p1, %p736_p12 }
 0x136   :  { %746 = shalt.err (!%p743_p2)
}
 0x137   :  { %487 = dma.vmem_to_hbm [thread:$0]  %s482_s16, 256, %s937_s11, [#allocation18], %s769_s22, %s769_s22, %s770_s23  }
 0x138   :  { %763 = dma.done.wait [#allocation7], 256  }
 0x139   :  { %764 = vsyncadd [#allocation7], 4294967040 }
 0x13a   :  { %765 = dma.done.wait [#allocation18], 512  }
 0x13b   :  { %766 = vsyncadd [#allocation18], 4294966784 }
 0x13c   :  { %497 = vsyncpa [#allocation6], 1 }
 0x13d   :  { %498 = vsyncpa [#allocation9], 1 }
 0x13e   :  { %499 = vsyncpa [#allocation12], 1 }
 0x13f   :  { %500 = vsyncpa [#allocation15], 1 }
 0x140   :  { %501 = vsyncpa [#allocation7], 1 }
 0x141   :  { %502 = vsyncpa [#allocation18], 1 }

</bundles_post_ra>
